<compile_context>
chip_gen: v6e
topology: v6e:2x2x1
jax: 0.10.0
libtpu: 0.0.40
codegen_flags: <defaults>
</compile_context>

<pallas_src>
import jax
import jax.numpy as jnp
from jax.experimental import pallas as pl
from jax.experimental.pallas import tpu as pltpu


def _hemax_kernel(beta_ref, x_ref, o_ref):
    # beta_ref: (1, 1) f32 in SMEM (runtime scalar -> no recompiles per beta).
    # x_ref / o_ref: (TR, COLS) VMEM tiles; rows are (batch, channel) pairs.
    beta = beta_ref[0, 0]
    x = x_ref[...].astype(jnp.float32)                 # compute in f32 (exact for f32/bf16)
    row_max = jnp.max(x, axis=-1, keepdims=True)       # per-(b, c) spatial max (XLU)
    o_ref[...] = jnp.where(x == row_max, x * beta, x).astype(o_ref.dtype)


def _round_up(a, m):
    return ((a + m - 1) // m) * m


def he_max_block(x, beta):
    """Pallas implementation of HEMaxBlock.forward.

    x: (B, C, H, W). Returns the same shape/dtype, with every element that
    equals its (B, C) spatial max multiplied by beta (ties all scaled, same
    as the PyTorch masked in-place update).
    """
    B, C, H, W = x.shape
    rows, cols = B * C, H * W
    dtype = x.dtype
    itemsize = jnp.dtype(dtype).itemsize

    # Lane-dense output: pad the spatial (lane) axis to a multiple of 128 so
    # stores are full-width vst instead of masked vst.msk.
    cols_p = _round_up(cols, 128)

    # Sublane packing: 8 rows/vreg for 32-bit, 16 for 16-bit, 32 for 8-bit.
    sub = 8 * max(1, 4 // itemsize)

    # Row tile: target ~4 MiB per block so the ~0.35us per-grid-step overhead
    # is amortised and DMAs stay on the HBM roofline. Double-buffered in+out
    # (~16 MiB) fits every generation's VMEM with the explicit limit below
    # (v7x: 64 MiB physical; v5e/v6e: 128 MiB physical).
    target_bytes = 4 * 1024 * 1024
    row_bytes = cols_p * itemsize
    tr = max(sub, (target_bytes // row_bytes) // sub * sub)
    tr = min(tr, _round_up(rows, sub))
    rows_p = _round_up(rows, tr)          # pad rows so the grid divides evenly
    n_blocks = rows_p // tr

    x2 = x.reshape(rows, cols)
    if cols_p != cols or rows_p != rows:
        # Pad the lane axis with the dtype minimum so per-row maxima are
        # unchanged; padded rows are independent and sliced away afterwards.
        if jnp.issubdtype(dtype, jnp.floating):
            fill = float("-inf")
        else:
            fill = int(jnp.iinfo(dtype).min)
        x2 = jnp.pad(
            x2,
            ((0, rows_p - rows), (0, cols_p - cols)),
            mode="constant",
            constant_values=fill,
        )

    beta_arr = jnp.full((1, 1), beta, dtype=jnp.float32)

    out2 = pl.pallas_call(
        _hemax_kernel,
        out_shape=jax.ShapeDtypeStruct((rows_p, cols_p), dtype),
        grid_spec=pltpu.PrefetchScalarGridSpec(
            num_scalar_prefetch=0,
            grid=(n_blocks,),
            in_specs=[
                pl.BlockSpec(memory_space=pltpu.MemorySpace.SMEM),   # beta scalar
                pl.BlockSpec((tr, cols_p), lambda i: (i, 0)),        # x tile
            ],
            out_specs=pl.BlockSpec((tr, cols_p), lambda i: (i, 0)),
        ),
        compiler_params=pltpu.CompilerParams(
            dimension_semantics=("parallel",),        # shard row blocks across TCs
            vmem_limit_bytes=48 * 1024 * 1024,        # safe on v5e/v6e/v7x
        ),
    )(beta_arr, x2)

    out2 = out2[:rows, :cols]
    return out2.reshape(B, C, H, W)


def _reference(x, beta):
    # Pure-JAX reference mirroring the PyTorch semantics.
    B, C, H, W = x.shape
    mx = jnp.max(x.reshape(B, C, -1), axis=-1)[:, :, None, None]
    return jnp.where(x == mx, x * beta, x)


if __name__ == "__main__":
    key = jax.random.PRNGKey(0)
    B, C, H, W = 2, 4, 16, 16
    x = jax.random.normal(key, (B, C, H, W), dtype=jnp.float32)
    beta = 0.5

    out = he_max_block(x, beta)
    out = jax.block_until_ready(out)

    ref = _reference(x, beta)
    assert out.shape == x.shape and out.dtype == x.dtype
    assert jnp.allclose(out, ref), "mismatch vs reference"

    # Quick ragged-shape sanity check (non-multiple-of-8 rows, cols < 128).
    x_odd = jax.random.normal(jax.random.PRNGKey(1), (3, 3, 7, 7), jnp.float32)
    out_odd = jax.block_until_ready(he_max_block(x_odd, 0.25))
    assert jnp.allclose(out_odd, _reference(x_odd, 0.25)), "ragged mismatch"

    print("KERNEL_OK")
</pallas_src>

<mosaic_0001>
module attributes {stable_mosaic.version = 11 : i64} {
  func.func @_hemax_kernel(%arg0: i32, %arg1: memref<1x1xf32, #tpu.memory_space<smem>>, %arg2: memref<8x256xf32, #tpu.memory_space<vmem>>, %arg3: memref<8x256xf32, #tpu.memory_space<vmem>>) attributes {dimension_semantics = [#tpu.dimension_semantics<parallel>], iteration_bounds = array<i64: 1>, scalar_prefetch = 0 : i64, scratch_operands = 0 : i64, tpu.core_type = #tpu.core_type<tc>, window_params = [{transform_indices = @transform_0, window_bounds = array<i64: 1, 1>}, {transform_indices = @transform_1, window_bounds = array<i64: 8, 256>}, {transform_indices = @transform_2, window_bounds = array<i64: 8, 256>}]} {
    %c0 = arith.constant 0 : index
    %c0_0 = arith.constant 0 : index
    %0 = memref.load %arg1[%c0, %c0_0] : memref<1x1xf32, #tpu.memory_space<smem>>
    %c0_1 = arith.constant 0 : index
    %c0_2 = arith.constant 0 : index
    %1 = vector.load %arg2[%c0_1, %c0_2] : memref<8x256xf32, #tpu.memory_space<vmem>>, vector<8x256xf32>
    %cst = arith.constant dense<0xFF800000> : vector<8xf32>
    %2 = vector.multi_reduction <maximumf>, %1, %cst [1] : vector<8x256xf32> to vector<8xf32>
    %3 = vector.shape_cast %2 : vector<8xf32> to vector<8x1xf32>
    %4 = vector.broadcast %3 : vector<8x1xf32> to vector<8x256xf32>
    %5 = arith.cmpf oeq, %1, %4 : vector<8x256xf32>
    %6 = vector.broadcast %0 : f32 to vector<8x256xf32>
    %7 = arith.mulf %1, %6 : vector<8x256xf32>
    %8 = arith.select %5, %7, %1 : vector<8x256xi1>, vector<8x256xf32>
    %c0_3 = arith.constant 0 : index
    %c0_4 = arith.constant 0 : index
    %9 = vector.load %arg3[%c0_3, %c0_4] : memref<8x256xf32, #tpu.memory_space<vmem>>, vector<8x256xf32>
    tpu.vector_store %arg3[%c0_3, %c0_4], %8 {strides = array<i32>} : memref<8x256xf32, #tpu.memory_space<vmem>>, vector<8x256xf32>,
    return
  }
  func.func @transform_0(%arg0: i32) -> (i32, i32) {
    %c0_i32 = arith.constant 0 : i32
    %c0_i32_0 = arith.constant 0 : i32
    %c0_i32_1 = arith.constant 0 : i32
    return %c0_i32, %c0_i32_0 : i32, i32
  }
  func.func @transform_1(%arg0: i32) -> (i32, i32) {
    %c0_i32 = arith.constant 0 : i32
    %c0_i32_0 = arith.constant 0 : i32
    return %arg0, %c0_i32 : i32, i32
  }
  func.func @transform_2(%arg0: i32) -> (i32, i32) {
    %c0_i32 = arith.constant 0 : i32
    %c0_i32_0 = arith.constant 0 : i32
    return %arg0, %c0_i32 : i32, i32
  }
}

</mosaic_0001>

<bundles_post_ra>
// kernel: tpu_custom_call.1
= control target key start
LH: loop header
LB: loop body
LE: loop exit
PB: predicated region body
PF: predicated region fallthrough
CT: control target
= control target key end

     0   :  { %8 = vsyncpa [#allocation4], 0  ;;  %s127_s0 = inlined_call_operand.<no memory space> [shape: f32[1,1], index: 0, kind: input, shape index: {}]   ;;  %s128_s1 = inlined_call_operand.hbm [shape: f32[8,256], index: 1, kind: input, shape index: {}]   ;;  %s129_s2 = inlined_call_operand.hbm [shape: f32[8,256], index: 2, kind: output, shape index: {}]  }
   0x1   :  { %9 = vsyncpa [#allocation5], 0  ;;  %s101_s9 = smov [#allocation3]  }
   0x2   :  { %s18_s10 = sshll.u32 %s101_s9, 4  ;;  %s19_s10 = int_to_ptr.vmem [resolvable:$true] %s18_s10 }
   0x3   :  { %s65_s11 = scalar_lea.vmem %s19_s10, 256  ;;  %p70_p1 = scmp.lt.s32.totalorder %s19_s10, %s19_s10 }
   0x4   :  { %p66_p0 = scmp.ne.s32.totalorder %s19_s10, %s65_s11  ;;  %p71_p2 = scmp.lt.s32.totalorder %s65_s11, %s65_s11 }
   0x6   :  { %p72_p3 = por %p71_p2, %p70_p1 }
   0x8   :  { %p73_p4 = pnand %p72_p3, %p66_p0 }
   0xa   :  { %76 = shalt.err (!%p73_p4)
}
   0xb   :  { %21 = dma.hbm_to_vmem [thread:$0]  %s128_s1, 256, %s19_s10, [#allocation4]  }
   0xc   :  { %97 = dma.done.wait [#allocation4], 256  }
   0xd   :  { %98 = vsyncadd [#allocation4], 4294967040  ;;  %v26_v0 = vld [vmem:[#allocation3] sm:$0xff]  ;;  %v27_v1 = vld [vmem:[#allocation3 + $0x8] sm:$0xff]  ;;  %v33_v3 = vstv %s127_s0  ;;  %s102_s16 = smov [#allocation6]  }
   0xe   :  { %v28_v2 = vmax.f32 %v26_v0, %v27_v1  ;;  %v34_v4 = vmul.f32 %v33_v3, %v26_v0  ;;  %v35_v5 = vmul.f32 %v33_v3, %v27_v1  ;;  %s46_s17 = sshll.u32 %s102_s16, 4  ;;  %s47_s17 = int_to_ptr.vmem [resolvable:$true] %s46_s17 }
   0xf   :  { %s77_s1 = scalar_lea.vmem %s47_s17, 256  ;;  %p82_p6 = scmp.lt.s32.totalorder %s47_s17, %s47_s17 }
  0x10   :  { %29 = vmax.xlane.f32.xlu0 %v28_v2  ;;  %p78_p5 = scmp.ne.s32.totalorder %s47_s17, %s77_s1  ;;  %p83_p7 = scmp.lt.s32.totalorder %s77_s1, %s77_s1 }
  0x12   :  { %p84_p8 = por %p83_p7, %p82_p6 }
  0x14   :  { %p85_p9 = pnand %p84_p8, %p78_p5 }
  0x99   :  { %v30_v6 = vpop.xlane.xlu0 %29 }
  0x9a   :  { %vm31_vm0 = vcmp.eq.f32.partialorder %v26_v0, %v30_v6  ;;  %vm32_vm1 = vcmp.eq.f32.partialorder %v27_v1, %v30_v6 }
  0x9b   :  { %v36_v7 = vsel %vm31_vm0, %v34_v4, %v26_v0  ;;  %v37_v8 = vsel %vm32_vm1, %v35_v5, %v27_v1 }
  0x9c   :  { %38 = vst [vmem:[#allocation6] sm:$0xff] %v36_v7  ;;  %39 = vst [vmem:[#allocation6 + $0x8] sm:$0xff] %v37_v8 }
  0x9d   :  { %88 = shalt.err (!%p85_p9)
}
  0x9e   :  { %49 = dma.vmem_to_hbm [thread:$0]  %s47_s17, 256, %s129_s2, [#allocation5]  }
  0x9f   :  { %99 = dma.done.wait [#allocation5], 256  }
  0xa0   :  { %100 = vsyncadd [#allocation5], 4294967040 }
  0xa1   :  { %53 = vsyncpa [#allocation4], 1 }
  0xa2   :  { %54 = vsyncpa [#allocation5], 1 }

</bundles_post_ra>
